<compile_context>
chip_gen: v5e
topology: v5e:2x2
jax: 0.10.0
libtpu: 0.0.40
codegen_flags: <defaults>
</compile_context>

<pallas_src>
import functools

import jax
import jax.numpy as jnp
from jax.experimental import pallas as pl
from jax.experimental.pallas import tpu as pltpu

INPUT_SIZE = 64
HIDDEN1 = 8
HIDDEN2 = 128
NUM_CLASSES = 10
PAD = 128  # lane-dense padded width for the narrow (8 / 10) feature dims


def _mlp_kernel(x_ref,
                w1_ref, b1_ref,
                w2_ref, b2_ref,
                wmid_ref, bmid_ref,
                w7_ref, b7_ref,
                o_ref,
                *, compute_dtype):
    """One (TB, INPUT_SIZE) activation tile -> one (TB, PAD) output tile."""

    def dense(h, w, b, relu=True):
        # MXU matmul in compute_dtype (bf16 or f32), f32 accumulation.
        y = jnp.dot(h.astype(compute_dtype), w.astype(compute_dtype),
                    preferred_element_type=jnp.float32)
        y = y + b.astype(jnp.float32)        # (1, out) broadcasts over batch, f32
        if relu:
            y = jnp.maximum(y, 0.0)
        return y

    h = x_ref[...].astype(jnp.float32)       # (TB, 64)
    h = dense(h, w1_ref[...], b1_ref[...])   # l1 + relu1   (TB, 128)  [cols 8..127 == 0]
    h = dense(h, w2_ref[...], b2_ref[...])   # l2 + relu2   (TB, 128)
    for k in range(4):                       # l3..l6 + relu (static unroll)
        h = dense(h, wmid_ref[k], bmid_ref[k])
    h = dense(h, w7_ref[...], b7_ref[...], relu=False)   # l7, no activation (TB, 128)
    o_ref[...] = h.astype(o_ref.dtype)


def neuralnet6_forward(x, params, *, tb=512, use_bf16=True):
    """x: (B, ...) with prod(...) == INPUT_SIZE.  params: 7 x (W (in,out), b (1,out))."""
    # nn.Flatten
    x = x.reshape(x.shape[0], -1).astype(jnp.float32)
    B = x.shape[0]
    assert x.shape[1] == INPUT_SIZE

    wdtype = jnp.bfloat16 if use_bf16 else jnp.float32

    def pad_to(a, shape):
        return jnp.pad(a, [(0, t - s) for s, t in zip(a.shape, shape)])

    (w1, b1), (w2, b2), (w3, b3), (w4, b4), (w5, b5), (w6, b6), (w7, b7) = params

    # Lane-dense padded parameters (zero padding is numerically exact here:
    # padded l1 columns produce relu(0)=0 activations that hit zero-padded W2 rows).
    w1p = pad_to(w1, (INPUT_SIZE, PAD)).astype(wdtype)      # (64, 128)
    b1p = pad_to(b1, (1, PAD)).astype(jnp.float32)          # (1, 128)
    w2p = pad_to(w2, (PAD, PAD)).astype(wdtype)             # (128, 128), zero rows 8..127
    b2p = b2.astype(jnp.float32)                            # (1, 128)
    wmid = jnp.stack([w3, w4, w5, w6]).astype(wdtype)       # (4, 128, 128)
    bmid = jnp.stack([b3, b4, b5, b6]).astype(jnp.float32)  # (4, 1, 128)
    w7p = pad_to(w7, (PAD, PAD)).astype(wdtype)             # (128, 128), zero cols 10..127
    b7p = pad_to(b7, (1, PAD)).astype(jnp.float32)          # (1, 128)

    # Batch tiling: TB multiple of 8, capped at `tb`; pad B up to a multiple of TB.
    TB = max(8, (min(tb, B) // 8) * 8)
    B_pad = pl.cdiv(B, TB) * TB
    if B_pad != B:
        x = jnp.pad(x, ((0, B_pad - B), (0, 0)))
    grid = (B_pad // TB,)

    def resident(a):
        # Constant index_map -> Pallas keeps the block resident across grid steps.
        return pl.BlockSpec(a.shape, lambda i, _nd=a.ndim: (0,) * _nd)

    weights = (w1p, b1p, w2p, b2p, wmid, bmid, w7p, b7p)
    in_specs = [pl.BlockSpec((TB, INPUT_SIZE), lambda i: (i, 0))] + \
               [resident(a) for a in weights]
    out_spec = pl.BlockSpec((TB, PAD), lambda i: (i, 0))
    out_shape = jax.ShapeDtypeStruct((B_pad, PAD), jnp.float32)

    kernel = functools.partial(_mlp_kernel, compute_dtype=wdtype)

    out = pl.pallas_call(
        kernel,
        out_shape=out_shape,
        grid=grid,
        in_specs=in_specs,
        out_specs=out_spec,
        compiler_params=pltpu.CompilerParams(
            dimension_semantics=("parallel",),            # v7x megacore; no-op on v5e/v6e
            vmem_limit_bytes=32 * 1024 * 1024),
    )(x, *weights)

    return out[:B, :NUM_CLASSES]


def init_params(key):
    """Deterministic init matching nn.Linear shapes (uniform(-1/sqrt(fan_in), +))."""
    dims = [(INPUT_SIZE, HIDDEN1),
            (HIDDEN1, HIDDEN2),
            (HIDDEN2, HIDDEN2),
            (HIDDEN2, HIDDEN2),
            (HIDDEN2, HIDDEN2),
            (HIDDEN2, HIDDEN2),
            (HIDDEN2, NUM_CLASSES)]
    params = []
    for fan_in, fan_out in dims:
        key, kw, kb = jax.random.split(key, 3)
        bound = 1.0 / jnp.sqrt(fan_in)
        w = jax.random.uniform(kw, (fan_in, fan_out), jnp.float32, -bound, bound)
        b = jax.random.uniform(kb, (1, fan_out), jnp.float32, -bound, bound)
        params.append((w, b))
    return params


def reference_forward(x, params):
    h = x.reshape(x.shape[0], -1)
    for i, (w, b) in enumerate(params):
        h = h @ w + b
        if i < len(params) - 1:
            h = jnp.maximum(h, 0.0)
    return h


if __name__ == "__main__":
    key = jax.random.PRNGKey(0)
    key, kx = jax.random.split(key)

    B = 8
    x = jax.random.normal(kx, (B, 8, 8), jnp.float32)   # Flatten -> (8, 64)
    params = init_params(key)

    ref = reference_forward(x, params)

    # f32 MXU path: strict check of kernel structure / padding / tiling.
    out_f32 = jax.block_until_ready(neuralnet6_forward(x, params, use_bf16=False))
    assert out_f32.shape == (B, NUM_CLASSES)
    assert jnp.allclose(out_f32, ref, atol=1e-4, rtol=1e-4)

    # bf16-MXU production path: loose check vs the f32 reference (bf16 matmul error).
    out_bf16 = jax.block_until_ready(neuralnet6_forward(x, params, use_bf16=True))
    assert out_bf16.shape == (B, NUM_CLASSES)
    assert jnp.allclose(out_bf16, ref, atol=5e-2, rtol=5e-2)

    print("KERNEL_OK")
</pallas_src>

<mosaic_0001>
module attributes {stable_mosaic.version = 11 : i64} {
  func.func @_mlp_kernel(%arg0: i32, %arg1: memref<8x64xf32, #tpu.memory_space<vmem>>, %arg2: memref<64x128xf32, #tpu.memory_space<vmem>>, %arg3: memref<1x128xf32, #tpu.memory_space<vmem>>, %arg4: memref<128x128xf32, #tpu.memory_space<vmem>>, %arg5: memref<1x128xf32, #tpu.memory_space<vmem>>, %arg6: memref<4x128x128xf32, #tpu.memory_space<vmem>>, %arg7: memref<4x1x128xf32, #tpu.memory_space<vmem>>, %arg8: memref<128x128xf32, #tpu.memory_space<vmem>>, %arg9: memref<1x128xf32, #tpu.memory_space<vmem>>, %arg10: memref<8x128xf32, #tpu.memory_space<vmem>>) attributes {dimension_semantics = [#tpu.dimension_semantics<parallel>], iteration_bounds = array<i64: 1>, scalar_prefetch = 0 : i64, scratch_operands = 0 : i64, tpu.core_type = #tpu.core_type<tc>, window_params = [{transform_indices = @transform_0, window_bounds = array<i64: 8, 64>}, {pipeline_mode = #tpu.pipeline_mode<synchronous>, transform_indices = @transform_1, window_bounds = array<i64: 64, 128>}, {pipeline_mode = #tpu.pipeline_mode<synchronous>, transform_indices = @transform_2, window_bounds = array<i64: 1, 128>}, {pipeline_mode = #tpu.pipeline_mode<synchronous>, transform_indices = @transform_3, window_bounds = array<i64: 128, 128>}, {pipeline_mode = #tpu.pipeline_mode<synchronous>, transform_indices = @transform_4, window_bounds = array<i64: 1, 128>}, {pipeline_mode = #tpu.pipeline_mode<synchronous>, transform_indices = @transform_5, window_bounds = array<i64: 4, 128, 128>}, {pipeline_mode = #tpu.pipeline_mode<synchronous>, transform_indices = @transform_6, window_bounds = array<i64: 4, 1, 128>}, {pipeline_mode = #tpu.pipeline_mode<synchronous>, transform_indices = @transform_7, window_bounds = array<i64: 128, 128>}, {pipeline_mode = #tpu.pipeline_mode<synchronous>, transform_indices = @transform_8, window_bounds = array<i64: 1, 128>}, {transform_indices = @transform_9, window_bounds = array<i64: 8, 128>}]} {
    %c0 = arith.constant 0 : index
    %c0_0 = arith.constant 0 : index
    %0 = vector.load %arg1[%c0, %c0_0] : memref<8x64xf32, #tpu.memory_space<vmem>>, vector<8x64xf32>
    %c0_1 = arith.constant 0 : index
    %c0_2 = arith.constant 0 : index
    %1 = vector.load %arg2[%c0_1, %c0_2] : memref<64x128xf32, #tpu.memory_space<vmem>>, vector<64x128xf32>
    %c0_3 = arith.constant 0 : index
    %c0_4 = arith.constant 0 : index
    %2 = vector.load %arg3[%c0_3, %c0_4] : memref<1x128xf32, #tpu.memory_space<vmem>>, vector<1x128xf32>
    %cst = arith.constant dense<0.000000e+00> : vector<8x128xf32>
    %3 = tpu.matmul %0, %1, %cst {dimension_numbers = #tpu.dot_dimension_numbers<[1], [0], [0], [1], [0, 0, 1, 1], [], []>} : vector<8x64xf32>, vector<64x128xf32>, vector<8x128xf32> -> vector<8x128xf32>
    %4 = vector.broadcast %2 : vector<1x128xf32> to vector<8x128xf32>
    %5 = arith.addf %3, %4 : vector<8x128xf32>
    %cst_5 = arith.constant 0.000000e+00 : f32
    %6 = vector.broadcast %cst_5 : f32 to vector<8x128xf32>
    %7 = arith.maximumf %5, %6 : vector<8x128xf32>
    %c0_6 = arith.constant 0 : index
    %c0_7 = arith.constant 0 : index
    %8 = vector.load %arg4[%c0_6, %c0_7] : memref<128x128xf32, #tpu.memory_space<vmem>>, vector<128x128xf32>
    %c0_8 = arith.constant 0 : index
    %c0_9 = arith.constant 0 : index
    %9 = vector.load %arg5[%c0_8, %c0_9] : memref<1x128xf32, #tpu.memory_space<vmem>>, vector<1x128xf32>
    %cst_10 = arith.constant dense<0.000000e+00> : vector<8x128xf32>
    %10 = tpu.matmul %7, %8, %cst_10 {dimension_numbers = #tpu.dot_dimension_numbers<[1], [0], [0], [1], [0, 0, 1, 1], [], []>} : vector<8x128xf32>, vector<128x128xf32>, vector<8x128xf32> -> vector<8x128xf32>
    %11 = vector.broadcast %9 : vector<1x128xf32> to vector<8x128xf32>
    %12 = arith.addf %10, %11 : vector<8x128xf32>
    %cst_11 = arith.constant 0.000000e+00 : f32
    %13 = vector.broadcast %cst_11 : f32 to vector<8x128xf32>
    %14 = arith.maximumf %12, %13 : vector<8x128xf32>
    %c0_12 = arith.constant 0 : index
    %c0_13 = arith.constant 0 : index
    %c0_14 = arith.constant 0 : index
    %15 = vector.load %arg6[%c0_12, %c0_13, %c0_14] : memref<4x128x128xf32, #tpu.memory_space<vmem>>, vector<1x128x128xf32>
    %16 = vector.shape_cast %15 : vector<1x128x128xf32> to vector<128x128xf32>
    %c0_15 = arith.constant 0 : index
    %c0_16 = arith.constant 0 : index
    %c0_17 = arith.constant 0 : index
    %17 = vector.load %arg7[%c0_15, %c0_16, %c0_17] : memref<4x1x128xf32, #tpu.memory_space<vmem>>, vector<1x1x128xf32>
    %18 = vector.shape_cast %17 : vector<1x1x128xf32> to vector<1x128xf32>
    %cst_18 = arith.constant dense<0.000000e+00> : vector<8x128xf32>
    %19 = tpu.matmul %14, %16, %cst_18 {dimension_numbers = #tpu.dot_dimension_numbers<[1], [0], [0], [1], [0, 0, 1, 1], [], []>} : vector<8x128xf32>, vector<128x128xf32>, vector<8x128xf32> -> vector<8x128xf32>
    %20 = vector.broadcast %18 : vector<1x128xf32> to vector<8x128xf32>
    %21 = arith.addf %19, %20 : vector<8x128xf32>
    %cst_19 = arith.constant 0.000000e+00 : f32
    %22 = vector.broadcast %cst_19 : f32 to vector<8x128xf32>
    %23 = arith.maximumf %21, %22 : vector<8x128xf32>
    %c1 = arith.constant 1 : index
    %c0_20 = arith.constant 0 : index
    %c0_21 = arith.constant 0 : index
    %24 = vector.load %arg6[%c1, %c0_20, %c0_21] : memref<4x128x128xf32, #tpu.memory_space<vmem>>, vector<1x128x128xf32>
    %25 = vector.shape_cast %24 : vector<1x128x128xf32> to vector<128x128xf32>
    %c1_22 = arith.constant 1 : index
    %c0_23 = arith.constant 0 : index
    %c0_24 = arith.constant 0 : index
    %26 = vector.load %arg7[%c1_22, %c0_23, %c0_24] : memref<4x1x128xf32, #tpu.memory_space<vmem>>, vector<1x1x128xf32>
    %27 = vector.shape_cast %26 : vector<1x1x128xf32> to vector<1x128xf32>
    %cst_25 = arith.constant dense<0.000000e+00> : vector<8x128xf32>
    %28 = tpu.matmul %23, %25, %cst_25 {dimension_numbers = #tpu.dot_dimension_numbers<[1], [0], [0], [1], [0, 0, 1, 1], [], []>} : vector<8x128xf32>, vector<128x128xf32>, vector<8x128xf32> -> vector<8x128xf32>
    %29 = vector.broadcast %27 : vector<1x128xf32> to vector<8x128xf32>
    %30 = arith.addf %28, %29 : vector<8x128xf32>
    %cst_26 = arith.constant 0.000000e+00 : f32
    %31 = vector.broadcast %cst_26 : f32 to vector<8x128xf32>
    %32 = arith.maximumf %30, %31 : vector<8x128xf32>
    %c2 = arith.constant 2 : index
    %c0_27 = arith.constant 0 : index
    %c0_28 = arith.constant 0 : index
    %33 = vector.load %arg6[%c2, %c0_27, %c0_28] : memref<4x128x128xf32, #tpu.memory_space<vmem>>, vector<1x128x128xf32>
    %34 = vector.shape_cast %33 : vector<1x128x128xf32> to vector<128x128xf32>
    %c2_29 = arith.constant 2 : index
    %c0_30 = arith.constant 0 : index
    %c0_31 = arith.constant 0 : index
    %35 = vector.load %arg7[%c2_29, %c0_30, %c0_31] : memref<4x1x128xf32, #tpu.memory_space<vmem>>, vector<1x1x128xf32>
    %36 = vector.shape_cast %35 : vector<1x1x128xf32> to vector<1x128xf32>
    %cst_32 = arith.constant dense<0.000000e+00> : vector<8x128xf32>
    %37 = tpu.matmul %32, %34, %cst_32 {dimension_numbers = #tpu.dot_dimension_numbers<[1], [0], [0], [1], [0, 0, 1, 1], [], []>} : vector<8x128xf32>, vector<128x128xf32>, vector<8x128xf32> -> vector<8x128xf32>
    %38 = vector.broadcast %36 : vector<1x128xf32> to vector<8x128xf32>
    %39 = arith.addf %37, %38 : vector<8x128xf32>
    %cst_33 = arith.constant 0.000000e+00 : f32
    %40 = vector.broadcast %cst_33 : f32 to vector<8x128xf32>
    %41 = arith.maximumf %39, %40 : vector<8x128xf32>
    %c3 = arith.constant 3 : index
    %c0_34 = arith.constant 0 : index
    %c0_35 = arith.constant 0 : index
    %42 = vector.load %arg6[%c3, %c0_34, %c0_35] : memref<4x128x128xf32, #tpu.memory_space<vmem>>, vector<1x128x128xf32>
    %43 = vector.shape_cast %42 : vector<1x128x128xf32> to vector<128x128xf32>
    %c3_36 = arith.constant 3 : index
    %c0_37 = arith.constant 0 : index
    %c0_38 = arith.constant 0 : index
    %44 = vector.load %arg7[%c3_36, %c0_37, %c0_38] : memref<4x1x128xf32, #tpu.memory_space<vmem>>, vector<1x1x128xf32>
    %45 = vector.shape_cast %44 : vector<1x1x128xf32> to vector<1x128xf32>
    %cst_39 = arith.constant dense<0.000000e+00> : vector<8x128xf32>
    %46 = tpu.matmul %41, %43, %cst_39 {dimension_numbers = #tpu.dot_dimension_numbers<[1], [0], [0], [1], [0, 0, 1, 1], [], []>} : vector<8x128xf32>, vector<128x128xf32>, vector<8x128xf32> -> vector<8x128xf32>
    %47 = vector.broadcast %45 : vector<1x128xf32> to vector<8x128xf32>
    %48 = arith.addf %46, %47 : vector<8x128xf32>
    %cst_40 = arith.constant 0.000000e+00 : f32
    %49 = vector.broadcast %cst_40 : f32 to vector<8x128xf32>
    %50 = arith.maximumf %48, %49 : vector<8x128xf32>
    %c0_41 = arith.constant 0 : index
    %c0_42 = arith.constant 0 : index
    %51 = vector.load %arg8[%c0_41, %c0_42] : memref<128x128xf32, #tpu.memory_space<vmem>>, vector<128x128xf32>
    %c0_43 = arith.constant 0 : index
    %c0_44 = arith.constant 0 : index
    %52 = vector.load %arg9[%c0_43, %c0_44] : memref<1x128xf32, #tpu.memory_space<vmem>>, vector<1x128xf32>
    %cst_45 = arith.constant dense<0.000000e+00> : vector<8x128xf32>
    %53 = tpu.matmul %50, %51, %cst_45 {dimension_numbers = #tpu.dot_dimension_numbers<[1], [0], [0], [1], [0, 0, 1, 1], [], []>} : vector<8x128xf32>, vector<128x128xf32>, vector<8x128xf32> -> vector<8x128xf32>
    %54 = vector.broadcast %52 : vector<1x128xf32> to vector<8x128xf32>
    %55 = arith.addf %53, %54 : vector<8x128xf32>
    %c0_46 = arith.constant 0 : index
    %c0_47 = arith.constant 0 : index
    %56 = vector.load %arg10[%c0_46, %c0_47] : memref<8x128xf32, #tpu.memory_space<vmem>>, vector<8x128xf32>
    tpu.vector_store %arg10[%c0_46, %c0_47], %55 {strides = array<i32>} : memref<8x128xf32, #tpu.memory_space<vmem>>, vector<8x128xf32>,
    return
  }
  func.func @transform_0(%arg0: i32) -> (i32, i32) {
    %c0_i32 = arith.constant 0 : i32
    %c0_i32_0 = arith.constant 0 : i32
    return %arg0, %c0_i32 : i32, i32
  }
  func.func @transform_1(%arg0: i32) -> (i32, i32) {
    %c0_i32 = arith.constant 0 : i32
    %c0_i32_0 = arith.constant 0 : i32
    %c0_i32_1 = arith.constant 0 : i32
    return %c0_i32, %c0_i32_0 : i32, i32
  }
  func.func @transform_2(%arg0: i32) -> (i32, i32) {
    %c0_i32 = arith.constant 0 : i32
    %c0_i32_0 = arith.constant 0 : i32
    %c0_i32_1 = arith.constant 0 : i32
    return %c0_i32, %c0_i32_0 : i32, i32
  }
  func.func @transform_3(%arg0: i32) -> (i32, i32) {
    %c0_i32 = arith.constant 0 : i32
    %c0_i32_0 = arith.constant 0 : i32
    %c0_i32_1 = arith.constant 0 : i32
    return %c0_i32, %c0_i32_0 : i32, i32
  }
  func.func @transform_4(%arg0: i32) -> (i32, i32) {
    %c0_i32 = arith.constant 0 : i32
    %c0_i32_0 = arith.constant 0 : i32
    %c0_i32_1 = arith.constant 0 : i32
    return %c0_i32, %c0_i32_0 : i32, i32
  }
  func.func @transform_5(%arg0: i32) -> (i32, i32, i32) {
    %c0_i32 = arith.constant 0 : i32
    %c0_i32_0 = arith.constant 0 : i32
    %c0_i32_1 = arith.constant 0 : i32
    %c0_i32_2 = arith.constant 0 : i32
    return %c0_i32, %c0_i32_0, %c0_i32_1 : i32, i32, i32
  }
  func.func @transform_6(%arg0: i32) -> (i32, i32, i32) {
    %c0_i32 = arith.constant 0 : i32
    %c0_i32_0 = arith.constant 0 : i32
    %c0_i32_1 = arith.constant 0 : i32
    %c0_i32_2 = arith.constant 0 : i32
    return %c0_i32, %c0_i32_0, %c0_i32_1 : i32, i32, i32
  }
  func.func @transform_7(%arg0: i32) -> (i32, i32) {
    %c0_i32 = arith.constant 0 : i32
    %c0_i32_0 = arith.constant 0 : i32
    %c0_i32_1 = arith.constant 0 : i32
    return %c0_i32, %c0_i32_0 : i32, i32
  }
  func.func @transform_8(%arg0: i32) -> (i32, i32) {
    %c0_i32 = arith.constant 0 : i32
    %c0_i32_0 = arith.constant 0 : i32
    %c0_i32_1 = arith.constant 0 : i32
    return %c0_i32, %c0_i32_0 : i32, i32
  }
  func.func @transform_9(%arg0: i32) -> (i32, i32) {
    %c0_i32 = arith.constant 0 : i32
    %c0_i32_0 = arith.constant 0 : i32
    return %arg0, %c0_i32 : i32, i32
  }
}

</mosaic_0001>

<bundles_post_ra>
// kernel: tpu_custom_call.1
= control target key start
LH: loop header
LB: loop body
LE: loop exit
PB: predicated region body
PF: predicated region fallthrough
CT: control target
= control target key end

     0   :  { %14 = vsyncpa [#allocation3], 0  ;;  %s741_s0 = inlined_call_operand.hbm [shape: f32[8,64], index: 0, kind: input, shape index: {}]   ;;  %s742_s1 = inlined_call_operand.hbm [shape: f32[64,128], index: 1, kind: input, shape index: {}]   ;;  %s743_s2 = inlined_call_operand.vmem [shape: f32[1,128], index: 2, kind: input, shape index: {}]   ;;  %s744_s3 = inlined_call_operand.hbm [shape: f32[128,128], index: 3, kind: input, shape index: {}]   ;;  %s745_s4 = inlined_call_operand.hbm [shape: f32[1,128], index: 4, kind: input, shape index: {}]   ;;  %s746_s5 = inlined_call_operand.hbm [shape: f32[4,128,128], index: 5, kind: input, shape index: {}]   ;;  %s747_s6 = inlined_call_operand.vmem [shape: f32[4,1,128], index: 6, kind: input, shape index: {}]   ;;  %s748_s7 = inlined_call_operand.hbm [shape: f32[128,128], index: 7, kind: input, shape index: {}]   ;;  %s749_s8 = inlined_call_operand.vmem [shape: f32[1,128], index: 8, kind: input, shape index: {}]   ;;  %s750_s9 = inlined_call_operand.hbm [shape: f32[8,128], index: 9, kind: output, shape index: {}]  }
   0x1   :  { %15 = vsyncpa [#allocation6], 0 }
   0x2   :  { %16 = vsyncpa [#allocation9], 0 }
   0x3   :  { %17 = vsyncpa [#allocation12], 0  ;;  %s34_s11 = sshll.u32 %s742_s1, 4  ;;  %s35_s11 = int_to_ptr.hbm [resolvable:$true] %s34_s11 }
   0x4   :  { %18 = vsyncpa [#allocation4], 0  ;;  %s631_s12 = smov [#allocation5]   ;;  %s63_s16 = sshll.u32 %s745_s4, 4  ;;  %s64_s16 = int_to_ptr.hbm [resolvable:$true] %s63_s16 }
   0x5   :  { %s36_s13 = sshll.u32 %s631_s12, 4  ;;  %s632_s17 = smov 128   ;;  %s37_s13 = int_to_ptr.vmem [resolvable:$true] %s36_s13 }
   0x6   :  { %s633_s18 = smov 8   ;;  %s634_s19 = smov [#allocation8]  }
   0x7   :  { %42 = dma.hbm_to_vmem [thread:$0]  %s35_s11, 1024, %s37_s13, [#allocation6], %s632_s17, %s632_s17, %s633_s18  }
   0x8   :  { %s65_s20 = sshll.u32 %s634_s19, 4  ;;  %s24_s22 = sshll.u32 %s741_s0, 4  ;;  %s66_s20 = int_to_ptr.vmem [resolvable:$true] %s65_s20  ;;  %s25_s22 = int_to_ptr.hbm [resolvable:$true] %s24_s22 }
   0x9   :  { %68 = dma.hbm_to_vmem [thread:$0]  %s64_s16, 16, %s66_s20, [#allocation9]  }
   0xa   :  { %s49_s4 = sshll.u32 %s744_s3, 4  ;;  %s635_s25 = smov [#allocation2]   ;;  %s50_s4 = int_to_ptr.hbm [resolvable:$true] %s49_s4 }
   0xb   :  { %s26_s26 = sshll.u32 %s635_s25, 4  ;;  %s636_s27 = smov [#allocation7]   ;;  %s27_s26 = int_to_ptr.vmem [resolvable:$true] %s26_s26 }
   0xc   :  { %29 = dma.hbm_to_vmem [thread:$0]  %s25_s22, 128, %s27_s26, [#allocation3]  }
   0xd   :  { %s51_s28 = sshll.u32 %s636_s27, 4  ;;  %s73_s10 = sshll.u32 %s746_s5, 4  ;;  %s52_s28 = int_to_ptr.vmem [resolvable:$true] %s51_s28  ;;  %s74_s10 = int_to_ptr.hbm [resolvable:$true] %s73_s10 }
   0xe   :  { %57 = dma.hbm_to_vmem [thread:$0]  %s50_s4, 2048, %s52_s28, [#allocation6], %s632_s17, %s632_s17, %s633_s18  }
   0xf   :  { %s88_s3 = sshll.u32 %s748_s7, 4  ;;  %s637_s12 = smov [#allocation10]   ;;  %s89_s3 = int_to_ptr.hbm [resolvable:$true] %s88_s3 }
  0x10   :  { %s75_s13 = sshll.u32 %s637_s12, 4  ;;  %s638_s14 = smov [#allocation11]   ;;  %s76_s13 = int_to_ptr.vmem [resolvable:$true] %s75_s13 }
  0x11   :  { %81 = dma.hbm_to_vmem [thread:$0]  %s74_s10, 8192, %s76_s13, [#allocation9], %s632_s17, %s632_s17, %s633_s18  }
  0x12   :  { %s90_s5 = sshll.u32 %s638_s14, 4  ;;  %s91_s5 = int_to_ptr.vmem [resolvable:$true] %s90_s5 }
  0x13   :  { %96 = dma.hbm_to_vmem [thread:$0]  %s89_s3, 2048, %s91_s5, [#allocation12], %s632_s17, %s632_s17, %s633_s18  }
  0x14   :  { %621 = dma.done.wait [#allocation3], 128  }
  0x15   :  { %622 = vsyncadd [#allocation3], 4294967168 }
  0x16   :  { %623 = dma.done.wait [#allocation6], 3072  }
  0x17   :  { %624 = vsyncadd [#allocation6], 4294964224 }
  0x18   :  { %625 = dma.done.wait [#allocation9], 8208  }
  0x19   :  { %626 = vsyncadd [#allocation9], 4294959088 }
  0x1a   :  { %627 = dma.done.wait [#allocation12], 2048  }
  0x1b   :  { %628 = vsyncadd [#allocation12], 4294965248  ;;  %v131_v0 = vld [vmem:[#allocation5 + $0x38] sm:$0xff]  ;;  %v130_v1 = vld [vmem:[#allocation5 + $0x30] sm:$0xff]  ;;  %vm136_vm0 = vcmask 523264   ;;  %s639_s24 = smov [#allocation13]  }
  0x1c   :  { %148 = vmatpush.msra.mxu0 %v131_v0  ;;  %v129_v2 = vld [vmem:[#allocation5 + $0x28] sm:$0xff]  ;;  %v176_v3 = vld [vmem:[#allocation7 + $0x78] sm:$0xff]  ;;  %v175_v4 = vld [vmem:[#allocation7 + $0x70] sm:$0xff]  ;;  %s418_s4 = sshll.u32 %s639_s24, 4  ;;  %s420_s27 = sshll.u32 %s750_s9, 4  ;;  %s419_s4 = int_to_ptr.vmem [resolvable:$true] %s418_s4  ;;  %s421_s27 = int_to_ptr.hbm [resolvable:$true] %s420_s27 }
  0x1d   :  { %v128_v5 = vld [vmem:[#allocation5 + $0x20] sm:$0xff]  ;;  %181 = vmatpush.msra.mxu1 %v176_v3  ;;  %v174_v6 = vld [vmem:[#allocation7 + $0x68] sm:$0xff]  ;;  %v127_v7 = vld [vmem:[#allocation5 + $0x18] sm:$0xff] }
  0x1e   :  { %149 = vmatpush.msra.mxu0 %v130_v1  ;;  %v126_v8 = vld [vmem:[#allocation5 + $0x10] sm:$0xff]  ;;  %v173_v9 = vld [vmem:[#allocation7 + $0x60] sm:$0xff]  ;;  %v172_v10 = vld [vmem:[#allocation7 + $0x58] sm:$0xff] }
  0x1f   :  { %182 = vmatpush.msra.mxu1 %v175_v4  ;;  %v125_v11 = vld [vmem:[#allocation5 + $0x8] sm:$0xff]  ;;  %v171_v12 = vld [vmem:[#allocation7 + $0x50] sm:$0xff]  ;;  %v124_v13 = vld [vmem:[#allocation5] sm:$0xff] }
  0x20   :  { %150 = vmatpush.msra.mxu0 %v129_v2  ;;  %v123_v14 = vld [vmem:[#allocation2] sm:$0xff]  ;;  %v170_v15 = vld [vmem:[#allocation7 + $0x48] sm:$0xff]  ;;  %v169_v16 = vld [vmem:[#allocation7 + $0x40] sm:$0xff] }
  0x21   :  { %183 = vmatpush.msra.mxu1 %v174_v6  ;;  %v168_v17 = vld [vmem:[#allocation7 + $0x38] sm:$0xff]  ;;  %v167_v18 = vld [vmem:[#allocation7 + $0x30] sm:$0xff]  ;;  %v166_v19 = vld [vmem:[#allocation7 + $0x28] sm:$0xff] }
  0x22   :  { %151 = vmatpush.msra.mxu0 %v128_v5  ;;  %v165_v20 = vld [vmem:[#allocation7 + $0x20] sm:$0xff]  ;;  %v164_v21 = vld [vmem:[#allocation7 + $0x18] sm:$0xff]  ;;  %v163_v22 = vld [vmem:[#allocation7 + $0x10] sm:$0xff] }
  0x23   :  { %184 = vmatpush.msra.mxu1 %v173_v9  ;;  %v162_v23 = vld [vmem:[#allocation7 + $0x8] sm:$0xff]  ;;  %v161_v24 = vld [vmem:[#allocation7] sm:$0xff]  ;;  %v216_v26 = vld [vmem:[#allocation10 + $0x70] sm:$0xff] }
  0x24   :  { %152 = vmatpush.msra.mxu0 %v127_v7  ;;  %v217_v25 = vld [vmem:[#allocation10 + $0x78] sm:$0xff]  ;;  %v215_v27 = vld [vmem:[#allocation10 + $0x68] sm:$0xff]  ;;  %v214_v28 = vld [vmem:[#allocation10 + $0x60] sm:$0xff] }
  0x25   :  { %185 = vmatpush.msra.mxu1 %v172_v10  ;;  %222 = vmatpush.msra.mxu2 %v217_v25  ;;  %v213_v29 = vld [vmem:[#allocation10 + $0x58] sm:$0xff]  ;;  %v212_v30 = vld [vmem:[#allocation10 + $0x50] sm:$0xff]  ;;  %v211_v31 = vld [vmem:[#allocation10 + $0x48] sm:$0xff] }
  0x26   :  { %153 = vmatpush.msra.mxu0 %v126_v8  ;;  %v210_v32 = vld [vmem:[#allocation10 + $0x40] sm:$0xff]  ;;  %v209_v33 = vld [vmem:[#allocation10 + $0x38] sm:$0xff]  ;;  %v208_v34 = vld [vmem:[#allocation10 + $0x30] sm:$0xff] }
  0x27   :  { %186 = vmatpush.msra.mxu1 %v171_v12  ;;  %223 = vmatpush.msra.mxu2 %v216_v26  ;;  %v207_v35 = vld [vmem:[#allocation10 + $0x28] sm:$0xff]  ;;  %v206_v36 = vld [vmem:[#allocation10 + $0x20] sm:$0xff]  ;;  %v205_v37 = vld [vmem:[#allocation10 + $0x18] sm:$0xff] }
  0x28   :  { %154 = vmatpush.msra.mxu0 %v125_v11  ;;  %v446_v38 = vld [vmem:[%s743_s2] ss:$0 sm:$0xff]  ;;  %v203_v43 = vld [vmem:[#allocation10 + $0x8] sm:$0xff]  ;;  %v202_v44 = vld [vmem:[#allocation10] sm:$0xff] }
  0x29   :  { %187 = vmatpush.msra.mxu1 %v170_v15  ;;  %224 = vmatpush.msra.mxu2 %v215_v27  ;;  %v204_v42 = vld [vmem:[#allocation10 + $0x10] sm:$0xff]  ;;  %v259_v45 = vld [vmem:[#allocation10 + $0xf8] sm:$0xff]  ;;  %v257_v47 = vld [vmem:[#allocation10 + $0xe8] sm:$0xff] }
  0x2a   :  { %155 = vmatpush.msra.mxu0 %v124_v13  ;;  %v258_v46 = vld [vmem:[#allocation10 + $0xf0] sm:$0xff]  ;;  %265 = vmatpush.msra.mxu3 %v259_v45  ;;  %v256_v48 = vld [vmem:[#allocation10 + $0xe0] sm:$0xff]  ;;  %v255_v49 = vld [vmem:[#allocation10 + $0xd8] sm:$0xff] }
  0x2b   :  { %433 = vmatmul.msk.f32.vlgmr.msra.gmra.mxu0 %vm136_vm0, %v123_v14  ;;  %188 = vmatpush.msra.mxu1 %v169_v16  ;;  %v254_v50 = vld [vmem:[#allocation10 + $0xd0] sm:$0xff]  ;;  %v253_v51 = vld [vmem:[#allocation10 + $0xc8] sm:$0xff]  ;;  %v252_v52 = vld [vmem:[#allocation10 + $0xc0] sm:$0xff] }
  0x2c   :  { %225 = vmatpush.msra.mxu2 %v214_v28  ;;  %266 = vmatpush.msra.mxu3 %v258_v46  ;;  %v251_v53 = vld [vmem:[#allocation10 + $0xb8] sm:$0xff]  ;;  %v250_v54 = vld [vmem:[#allocation10 + $0xb0] sm:$0xff]  ;;  %v249_v55 = vld [vmem:[#allocation10 + $0xa8] sm:$0xff] }
  0x2d   :  { %189 = vmatpush.msra.mxu1 %v168_v17  ;;  %v248_v56 = vld [vmem:[#allocation10 + $0xa0] sm:$0xff]  ;;  %v247_v57 = vld [vmem:[#allocation10 + $0x98] sm:$0xff]  ;;  %v246_v62 = vld [vmem:[#allocation10 + $0x90] sm:$0xff] }
  0x2e   :  { %226 = vmatpush.msra.mxu2 %v213_v29  ;;  %267 = vmatpush.msra.mxu3 %v257_v47  ;;  %v447_v58 = vld [vmem:[#allocation8] ss:$0 sm:$0xff]  ;;  %v245_v63 = vld [vmem:[#allocation10 + $0x88] sm:$0xff]  ;;  %v244_v0 = vld [vmem:[#allocation10 + $0x80] sm:$0xff] }
  0x2f   :  { %190 = vmatpush.msra.mxu1 %v167_v18  ;;  %v302_v1 = vld [vmem:[#allocation10 + $0x178] sm:$0xff]  ;;  %v301_v2 = vld [vmem:[#allocation10 + $0x170] sm:$0xff]  ;;  %v300_v3 = vld [vmem:[#allocation10 + $0x168] sm:$0xff] }
  0x30   :  { %227 = vmatpush.msra.mxu2 %v212_v30  ;;  %268 = vmatpush.msra.mxu3 %v256_v48  ;;  %v299_v4 = vld [vmem:[#allocation10 + $0x160] sm:$0xff]  ;;  %v298_v5 = vld [vmem:[#allocation10 + $0x158] sm:$0xff]  ;;  %v297_v6 = vld [vmem:[#allocation10 + $0x150] sm:$0xff] }
  0x31   :  { %191 = vmatpush.msra.mxu1 %v166_v19  ;;  %308 = vmatpush.msrb.mxu0 %v302_v1  ;;  %v296_v7 = vld [vmem:[#allocation10 + $0x148] sm:$0xff]  ;;  %v295_v8 = vld [vmem:[#allocation10 + $0x140] sm:$0xff]  ;;  %v294_v9 = vld [vmem:[#allocation10 + $0x138] sm:$0xff] }
  0x32   :  { %228 = vmatpush.msra.mxu2 %v211_v31  ;;  %269 = vmatpush.msra.mxu3 %v255_v49  ;;  %v293_v10 = vld [vmem:[#allocation10 + $0x130] sm:$0xff]  ;;  %v292_v11 = vld [vmem:[#allocation10 + $0x128] sm:$0xff]  ;;  %v291_v12 = vld [vmem:[#allocation10 + $0x120] sm:$0xff] }
  0x33   :  { %192 = vmatpush.msra.mxu1 %v165_v20  ;;  %309 = vmatpush.msrb.mxu0 %v301_v2  ;;  %v290_v13 = vld [vmem:[#allocation10 + $0x118] sm:$0xff]  ;;  %v448_v14 = vld [vmem:[%s747_s6] ss:$0 sm:$0xff]  ;;  %v288_v19 = vld [vmem:[#allocation10 + $0x108] sm:$0xff] }
  0x34   :  { %229 = vmatpush.msra.mxu2 %v210_v32  ;;  %270 = vmatpush.msra.mxu3 %v254_v50  ;;  %v289_v18 = vld [vmem:[#allocation10 + $0x110] sm:$0xff]  ;;  %v287_v20 = vld [vmem:[#allocation10 + $0x100] sm:$0xff]  ;;  %v341_v25 = vld [vmem:[#allocation10 + $0x1d8] sm:$0xff] }
  0x35   :  { %193 = vmatpush.msra.mxu1 %v164_v21  ;;  %310 = vmatpush.msrb.mxu0 %v300_v3  ;;  %v345_v21 = vld [vmem:[#allocation10 + $0x1f8] sm:$0xff]  ;;  %v340_v26 = vld [vmem:[#allocation10 + $0x1d0] sm:$0xff]  ;;  %v339_v27 = vld [vmem:[#allocation10 + $0x1c8] sm:$0xff] }
  0x36   :  { %230 = vmatpush.msra.mxu2 %v209_v33  ;;  %271 = vmatpush.msra.mxu3 %v253_v51  ;;  %v338_v28 = vld [vmem:[#allocation10 + $0x1c0] sm:$0xff]  ;;  %v337_v29 = vld [vmem:[#allocation10 + $0x1b8] sm:$0xff]  ;;  %v336_v30 = vld [vmem:[#allocation10 + $0x1b0] sm:$0xff] }
  0x37   :  { %194 = vmatpush.msra.mxu1 %v163_v22  ;;  %311 = vmatpush.msrb.mxu0 %v299_v4  ;;  %v344_v22 = vld [vmem:[#allocation10 + $0x1f0] sm:$0xff]  ;;  %v335_v31 = vld [vmem:[#allocation10 + $0x1a8] sm:$0xff]  ;;  %v334_v32 = vld [vmem:[#allocation10 + $0x1a0] sm:$0xff] }
  0x38   :  { %231 = vmatpush.msra.mxu2 %v208_v34  ;;  %272 = vmatpush.msra.mxu3 %v252_v52  ;;  %v333_v33 = vld [vmem:[#allocation10 + $0x198] sm:$0xff]  ;;  %v449_v34 = vld [vmem:[%s747_s6 + $0x1] ss:$0 sm:$0xff]  ;;  %v381_v47 = vld [vmem:[#allocation11 + $0x48] sm:$0xff] }
  0x39   :  { %195 = vmatpush.msra.mxu1 %v162_v23  ;;  %312 = vmatpush.msrb.mxu0 %v298_v5  ;;  %v343_v23 = vld [vmem:[#allocation10 + $0x1e8] sm:$0xff]  ;;  %v383_v45 = vld [vmem:[#allocation11 + $0x58] sm:$0xff]  ;;  %v382_v46 = vld [vmem:[#allocation11 + $0x50] sm:$0xff] }
  0x3a   :  { %232 = vmatpush.msra.mxu2 %v207_v35  ;;  %273 = vmatpush.msra.mxu3 %v251_v53  ;;  %v380_v48 = vld [vmem:[#allocation11 + $0x40] sm:$0xff]  ;;  %v379_v49 = vld [vmem:[#allocation11 + $0x38] sm:$0xff]  ;;  %v378_v50 = vld [vmem:[#allocation11 + $0x30] sm:$0xff] }
  0x3b   :  { %196 = vmatpush.msra.mxu1 %v161_v24  ;;  %313 = vmatpush.msrb.mxu0 %v297_v6  ;;  %v342_v24 = vld [vmem:[#allocation10 + $0x1e0] sm:$0xff]  ;;  %v377_v51 = vld [vmem:[#allocation11 + $0x28] sm:$0xff]  ;;  %v375_v53 = vld [vmem:[#allocation11 + $0x18] sm:$0xff] }
  0x3c   :  { %233 = vmatpush.msra.mxu2 %v206_v36  ;;  %274 = vmatpush.msra.mxu3 %v250_v54  ;;  %v376_v52 = vld [vmem:[#allocation11 + $0x20] sm:$0xff]  ;;  %v450_v54 = vld [vmem:[%s747_s6 + $0x2] ss:$0 sm:$0xff]  ;;  %v452_v1 = vld [vmem:[%s749_s8] ss:$0 sm:$0xff] }
  0x3d   :  { %314 = vmatpush.msrb.mxu0 %v296_v7  ;;  %351 = vmatpush.msrb.mxu1 %v345_v21 }
  0x3e   :  { %234 = vmatpush.msra.mxu2 %v205_v37  ;;  %275 = vmatpush.msra.mxu3 %v249_v55 }
  0x3f   :  { %315 = vmatpush.msrb.mxu0 %v295_v8  ;;  %352 = vmatpush.msrb.mxu1 %v344_v22 }
  0x40   :  { %235 = vmatpush.msra.mxu2 %v204_v42  ;;  %276 = vmatpush.msra.mxu3 %v248_v56  ;;  %v386_v42 = vld [vmem:[#allocation11 + $0x70] sm:$0xff] }
  0x41   :  { %316 = vmatpush.msrb.mxu0 %v294_v9  ;;  %353 = vmatpush.msrb.mxu1 %v343_v23 }
  0x42   :  { %236 = vmatpush.msra.mxu2 %v203_v43  ;;  %277 = vmatpush.msra.mxu3 %v247_v57  ;;  %v385_v43 = vld [vmem:[#allocation11 + $0x68] sm:$0xff] }
  0x43   :  { %317 = vmatpush.msrb.mxu0 %v293_v10  ;;  %354 = vmatpush.msrb.mxu1 %v342_v24 }
  0x44   :  { %237 = vmatpush.msra.mxu2 %v202_v44  ;;  %278 = vmatpush.msra.mxu3 %v246_v62  ;;  %v384_v44 = vld [vmem:[#allocation11 + $0x60] sm:$0xff] }
  0x45   :  { %318 = vmatpush.msrb.mxu0 %v292_v11  ;;  %355 = vmatpush.msrb.mxu1 %v341_v25 }
  0x46   :  { %279 = vmatpush.msra.mxu3 %v245_v63 }
  0x47   :  { %319 = vmatpush.msrb.mxu0 %v291_v12  ;;  %356 = vmatpush.msrb.mxu1 %v340_v26 }
  0x48   :  { %280 = vmatpush.msra.mxu3 %v244_v0 }
  0x49   :  { %320 = vmatpush.msrb.mxu0 %v290_v13  ;;  %357 = vmatpush.msrb.mxu1 %v339_v27 }
  0x4b   :  { %321 = vmatpush.msrb.mxu0 %v289_v18  ;;  %358 = vmatpush.msrb.mxu1 %v338_v28 }
  0x4d   :  { %322 = vmatpush.msrb.mxu0 %v288_v19  ;;  %359 = vmatpush.msrb.mxu1 %v337_v29 }
  0x4f   :  { %323 = vmatpush.msrb.mxu0 %v287_v20  ;;  %360 = vmatpush.msrb.mxu1 %v336_v30 }
  0x51   :  { %361 = vmatpush.msrb.mxu1 %v335_v31 }
  0x53   :  { %362 = vmatpush.msrb.mxu1 %v334_v32 }
  0x55   :  { %363 = vmatpush.msrb.mxu1 %v333_v33 }
  0xa8   :  { %v157_v39 = vpop.f32.mrf.mxu0 }
  0xa9   :  { %v158_v40 = vadd.f32 %v446_v38, %v157_v39  ;;  %v332_v38 = vld [vmem:[#allocation10 + $0x190] sm:$0xff]  ;;  %v331_v39 = vld [vmem:[#allocation10 + $0x188] sm:$0xff] }
  0xaa   :  { %364 = vmatpush.msrb.mxu1 %v332_v38 }
  0xab   :  { %v160_v41 = vmax.f32 %v158_v40, 0.0  ;;  %v330_v40 = vld [vmem:[#allocation10 + $0x180] sm:$0xff] }
  0xac   :  { %365 = vmatpush.msrb.mxu1 %v331_v39 }
  0xad   :  { %197 = vmatmul.f32.vlgmr.msra.gmra.mxu1 %v160_v41  ;;  %v387_v41 = vld [vmem:[#allocation11 + $0x78] sm:$0xff] }
  0xae   :  { %366 = vmatpush.msrb.mxu1 %v330_v40  ;;  %392 = vmatpush.msrb.mxu2 %v387_v41 }
  0xb0   :  { %393 = vmatpush.msrb.mxu2 %v386_v42 }
  0xb2   :  { %394 = vmatpush.msrb.mxu2 %v385_v43 }
  0xb4   :  { %395 = vmatpush.msrb.mxu2 %v384_v44 }
  0xb6   :  { %396 = vmatpush.msrb.mxu2 %v383_v45 }
  0xb8   :  { %397 = vmatpush.msrb.mxu2 %v382_v46 }
  0xba   :  { %398 = vmatpush.msrb.mxu2 %v381_v47 }
  0xbc   :  { %399 = vmatpush.msrb.mxu2 %v380_v48 }
  0xbe   :  { %400 = vmatpush.msrb.mxu2 %v379_v49 }
  0xc0   :  { %401 = vmatpush.msrb.mxu2 %v378_v50 }
  0xc2   :  { %402 = vmatpush.msrb.mxu2 %v377_v51 }
  0xc4   :  { %403 = vmatpush.msrb.mxu2 %v376_v52 }
  0xc6   :  { %404 = vmatpush.msrb.mxu2 %v375_v53 }
 0x12a   :  { %v198_v59 = vpop.f32.mrf.mxu1 }
 0x12b   :  { %v199_v60 = vadd.f32 %v447_v58, %v198_v59  ;;  %v374_v58 = vld [vmem:[#allocation11 + $0x10] sm:$0xff]  ;;  %v373_v59 = vld [vmem:[#allocation11 + $0x8] sm:$0xff] }
 0x12c   :  { %405 = vmatpush.msrb.mxu2 %v374_v58 }
 0x12d   :  { %v201_v61 = vmax.f32 %v199_v60, 0.0  ;;  %v372_v60 = vld [vmem:[#allocation11] sm:$0xff] }
 0x12e   :  { %406 = vmatpush.msrb.mxu2 %v373_v59 }
 0x12f   :  { %238 = vmatmul.f32.vlgmr.msra.gmra.mxu2 %v201_v61  ;;  %v451_v61 = vld [vmem:[%s747_s6 + $0x3] ss:$0 sm:$0xff] }
 0x130   :  { %407 = vmatpush.msrb.mxu2 %v372_v60 }
 0x1b2   :  { %v239_v15 = vpop.f32.mrf.mxu2 }
 0x1b3   :  { %v240_v16 = vadd.f32 %v448_v14, %v239_v15 }
 0x1b5   :  { %v242_v17 = vmax.f32 %v240_v16, 0.0 }
 0x1b7   :  { %281 = vmatmul.f32.vlgmr.msra.gmra.mxu3 %v242_v17 }
 0x23a   :  { %v282_v35 = vpop.f32.mrf.mxu3 }
 0x23b   :  { %v283_v36 = vadd.f32 %v449_v34, %v282_v35 }
 0x23d   :  { %v285_v37 = vmax.f32 %v283_v36, 0.0 }
 0x23f   :  { %324 = vmatmul.f32.vlgmr.msrb.gmra.mxu0 %v285_v37 }
 0x2bc   :  { %v325_v55 = vpop.f32.mrf.mxu0 }
 0x2bd   :  { %v326_v56 = vadd.f32 %v450_v54, %v325_v55 }
 0x2bf   :  { %v328_v57 = vmax.f32 %v326_v56, 0.0 }
 0x2c1   :  { %367 = vmatmul.f32.vlgmr.msrb.gmra.mxu1 %v328_v57 }
 0x33e   :  { %v368_v62 = vpop.f32.mrf.mxu1 }
 0x33f   :  { %v369_v63 = vadd.f32 %v451_v61, %v368_v62 }
 0x341   :  { %v371_v0 = vmax.f32 %v369_v63, 0.0 }
 0x343   :  { %408 = vmatmul.f32.vlgmr.msrb.gmra.mxu2 %v371_v0 }
 0x3c6   :  { %v409_v2 = vpop.f32.mrf.mxu2 }
 0x3c7   :  { %v410_v3 = vadd.f32 %v452_v1, %v409_v2 }
 0x3c9   :  { %412 = vst [vmem:[#allocation13] sm:$0xff] %v410_v3 }
 0x3ca   :  { %423 = dma.vmem_to_hbm [thread:$0]  %s419_s4, 128, %s421_s27, [#allocation4]  }
 0x3cb   :  { %629 = dma.done.wait [#allocation4], 128  }
 0x3cc   :  { %630 = vsyncadd [#allocation4], 4294967168 }
 0x3cd   :  { %428 = vsyncpa [#allocation3], 1 }
 0x3ce   :  { %429 = vsyncpa [#allocation6], 1 }
 0x3cf   :  { %430 = vsyncpa [#allocation9], 1 }
 0x3d0   :  { %431 = vsyncpa [#allocation12], 1 }
 0x3d1   :  { %432 = vsyncpa [#allocation4], 1 }

</bundles_post_ra>
